<compile_context>
chip_gen: v6e
topology: v6e:2x2x1
jax: 0.10.0
libtpu: 0.0.40
codegen_flags: <defaults>
</compile_context>

<pallas_src>
import functools

import jax
import jax.numpy as jnp
from jax.experimental import pallas as pl
from jax.experimental.pallas import tpu as pltpu


def _round_up(x, m):
    return (x + m - 1) // m * m


# ----------------------------------------------------------------------------
# Fused kernel: surrogate VAE recon + residual + patch embedding + per-image
# mean pool + fc head.  One grid step handles bb images (M = bb*P patch rows).
# ----------------------------------------------------------------------------
def _fused_kernel(patches_ref, w_rec_ref, w_emb_ref, b_emb_ref,
                  w_fc_ref, b_fc_ref, *out_refs, bb, P, with_feat):
    p_bf = patches_ref[...]                               # (M, dp) bf16
    # surrogate VAE reconstruction: bf16 MXU matmul, f32 accumulation
    recon = jnp.tanh(jnp.dot(p_bf, w_rec_ref[...],
                             preferred_element_type=jnp.float32))
    # artifact / residual signal (f32 elementwise)
    resid = p_bf.astype(jnp.float32) - recon
    # patch embedding (conv-as-matmul): bf16 inputs, f32 accumulation
    h = jnp.dot(resid.astype(jnp.bfloat16), w_emb_ref[...],
                preferred_element_type=jnp.float32) + b_emb_ref[...]
    h = jnp.maximum(h, 0.0)                               # (M, D) f32
    # per-image mean over P patches: reshape + sublane-axis reduce (XLU slot,
    # overlaps the MXU; no f32 pool matmul)
    feat = jnp.sum(h.reshape(bb, P, h.shape[-1]), axis=1) * jnp.float32(1.0 / P)

    if with_feat:
        feat_ref, out_ref = out_refs
        feat_ref[...] = feat
    else:
        (out_ref,) = out_refs

    # fused fc head: bf16 x bf16 MXU, f32 accumulation, f32 bias add.
    # Output lane-padded to 128 -> unmasked lane-dense store.
    out_ref[...] = (jnp.dot(feat.astype(jnp.bfloat16), w_fc_ref[...],
                            preferred_element_type=jnp.float32)
                    + b_fc_ref[...])


def encoder_fc_call(patches_flat, w_rec, w_emb, b_emb, w_fc, b_fc,
                    *, bb, P, dim_artifact, nc_pad, with_feat):
    m_total, dp = patches_flat.shape
    M = bb * P
    nb = m_total // M

    kernel = functools.partial(_fused_kernel, bb=bb, P=P, with_feat=with_feat)

    out_shapes = []
    out_specs = []
    if with_feat:
        out_shapes.append(jax.ShapeDtypeStruct((nb * bb, dim_artifact),
                                               jnp.float32))
        out_specs.append(pl.BlockSpec((bb, dim_artifact), lambda i: (i, 0)))
    out_shapes.append(jax.ShapeDtypeStruct((nb * bb, nc_pad), jnp.float32))
    out_specs.append(pl.BlockSpec((bb, nc_pad), lambda i: (i, 0)))

    # VMEM budget: double-buffered bf16 patch block + f32 recon/resid/h
    # temporaries + weights + double-buffered output blocks (+50% headroom).
    est = (2 * M * dp * 2                                   # patches (bf16) x2
           + 2 * M * dp * 4 + M * dim_artifact * 4          # recon/resid + h
           + (dp * dp + dp * dim_artifact + dim_artifact * nc_pad) * 2
           + (dim_artifact + nc_pad) * 4                    # biases
           + 2 * 2 * bb * (dim_artifact + nc_pad) * 4)      # output blocks
    vmem_bytes = int(min(max(int(est * 1.5) + (2 << 20), 32 << 20), 64 << 20))

    res = pl.pallas_call(
        kernel,
        out_shape=tuple(out_shapes),
        grid=(nb,),
        in_specs=[
            pl.BlockSpec((M, dp), lambda i: (i, 0)),              # patches
            pl.BlockSpec((dp, dp), lambda i: (0, 0)),             # w_rec
            pl.BlockSpec((dp, dim_artifact), lambda i: (0, 0)),   # w_emb
            pl.BlockSpec((1, dim_artifact), lambda i: (0, 0)),    # b_emb
            pl.BlockSpec((dim_artifact, nc_pad), lambda i: (0, 0)),  # w_fc
            pl.BlockSpec((1, nc_pad), lambda i: (0, 0)),          # b_fc
        ],
        out_specs=tuple(out_specs),
        compiler_params=pltpu.CompilerParams(
            dimension_semantics=("parallel",),
            vmem_limit_bytes=vmem_bytes),
    )(patches_flat, w_rec, w_emb, b_emb, w_fc, b_fc)

    if with_feat:
        return res[0], res[1]
    return None, res[-1]


class ArtifactDetectorPallas:
    """JAX/Pallas port of ArtifactDetector.forward (synthetic weights)."""

    def __init__(self, dim_artifact=512, num_classes=1, patch_size=8,
                 in_channels=3, key=jax.random.PRNGKey(0)):
        self.dim_artifact = dim_artifact
        self.num_classes = num_classes
        self.patch_size = patch_size
        self.in_channels = in_channels

        dp = patch_size * patch_size * in_channels
        self.dp = dp
        self.nc_pad = _round_up(num_classes, 128)   # lane-dense fc output

        k1, k2, k3, k4 = jax.random.split(key, 4)
        # f32 reference parameters (surrogate VAE recon + feature encoder + fc)
        self.w_rec = 0.05 * jax.random.normal(k1, (dp, dp), jnp.float32)
        self.w_emb = 0.05 * jax.random.normal(k2, (dp, dim_artifact),
                                              jnp.float32)
        self.b_emb = jnp.zeros((1, dim_artifact), jnp.float32)
        self.w_fc = 0.05 * jax.random.normal(k3, (dim_artifact, num_classes),
                                             jnp.float32)
        self.b_fc = 0.01 * jax.random.normal(k4, (1, num_classes), jnp.float32)

        # Kernel-side parameters: bf16 for the MXU matmuls (f32 accumulation);
        # fc weight zero-padded along the class axis for a lane-dense store.
        self.w_rec_k = self.w_rec.astype(jnp.bfloat16)
        self.w_emb_k = self.w_emb.astype(jnp.bfloat16)
        self.b_emb_k = self.b_emb
        self.w_fc_k = (jnp.zeros((dim_artifact, self.nc_pad), jnp.bfloat16)
                       .at[:, :num_classes].set(self.w_fc.astype(jnp.bfloat16)))
        self.b_fc_k = (jnp.zeros((1, self.nc_pad), jnp.float32)
                       .at[:, :num_classes].set(self.b_fc))

    # ---- patch extraction (layout plumbing, stays in the JAX wrapper) ------
    def _extract_patches(self, x_nchw):
        B, C, H, W = x_nchw.shape
        ps = self.patch_size
        assert H % ps == 0 and W % ps == 0
        x = jnp.transpose(x_nchw, (0, 2, 3, 1))                  # NHWC
        x = x.reshape(B, H // ps, ps, W // ps, ps, C)
        x = jnp.transpose(x, (0, 1, 3, 2, 4, 5))                 # B,hP,wP,ps,ps,C
        return x.reshape(B, (H // ps) * (W // ps), ps * ps * C)

    @staticmethod
    def _choose_bb(B, P, target_rows=2048):
        # bb images per grid step so M = bb*P ~= 2048 rows: amortizes the
        # ~0.35us per-grid-step overhead and MXU weight push/drain.
        bb = max(1, target_rows // P)
        if bb < B:
            # multiple grid steps: keep bb a multiple of 8 so the (bb, 512)
            # and (bb, 128) output blocks tile cleanly on (8, 128) vregs.
            return max(8, bb - bb % 8)
        # Whole batch fits in one step.  If the batch carries enough work,
        # split into 2 steps so the "parallel" axis can use both v7x TCs.
        if B % 16 == 0 and (B // 2) * P >= 1024:
            return B // 2
        return B

    # ---- forward -----------------------------------------------------------
    def __call__(self, x_nchw, return_feat=False):
        B = x_nchw.shape[0]
        patches = self._extract_patches(x_nchw.astype(jnp.float32))
        _, P, dp = patches.shape

        # bf16 patch stream (halves HBM->VMEM bytes); last dim stays at the
        # natural dp (192) -- no wrapper zero-pad pass, Mosaic pads K in VMEM.
        patches = patches.astype(jnp.bfloat16)

        bb = self._choose_bb(B, P)
        B_pad = _round_up(B, bb)
        if B_pad != B:
            patches = jnp.pad(patches, ((0, B_pad - B), (0, 0), (0, 0)))
        patches_flat = patches.reshape(B_pad * P, dp)

        feat, out_pad = encoder_fc_call(
            patches_flat, self.w_rec_k, self.w_emb_k, self.b_emb_k,
            self.w_fc_k, self.b_fc_k,
            bb=bb, P=P, dim_artifact=self.dim_artifact, nc_pad=self.nc_pad,
            with_feat=return_feat)

        out = out_pad[:B, :self.num_classes]
        if return_feat:
            return feat[:B], out
        return out

    # ---- pure-JAX f32 reference (for tolerance testing) --------------------
    def reference_forward(self, x_nchw):
        patches = self._extract_patches(x_nchw.astype(jnp.float32))
        recon = jnp.tanh(jnp.einsum("bpd,de->bpe", patches, self.w_rec))
        resid = patches - recon
        h = jnp.maximum(
            jnp.einsum("bpd,de->bpe", resid, self.w_emb) + self.b_emb, 0.0)
        feat = jnp.mean(h, axis=1)
        out = feat @ self.w_fc + self.b_fc
        return feat, out


if __name__ == "__main__":
    key = jax.random.PRNGKey(0)
    kx, kw = jax.random.split(key)

    # Small NCHW image batch (PyTorch convention): B=2, C=3, H=W=32.
    x = jax.random.uniform(kx, (2, 3, 32, 32), jnp.float32)

    model = ArtifactDetectorPallas(dim_artifact=512, num_classes=1,
                                   patch_size=8, in_channels=3, key=kw)

    # return_feat=True path (feat + logits)
    feat, out = model(x, return_feat=True)
    feat = jax.block_until_ready(feat)
    out = jax.block_until_ready(out)

    assert feat.shape == (2, 512), feat.shape
    assert out.shape == (2, 1), out.shape
    assert jnp.all(jnp.isfinite(feat)) and jnp.all(jnp.isfinite(out))

    # return_feat=False path (no feat HBM writeback)
    out_only = jax.block_until_ready(model(x, return_feat=False))
    assert out_only.shape == (2, 1), out_only.shape
    assert jnp.all(jnp.isfinite(out_only))

    # f32 reference check (bf16 matmul inputs / f32 accumulation -> loose tol)
    feat_ref, out_ref = model.reference_forward(x)
    assert jnp.max(jnp.abs(feat - feat_ref)) < 5e-2
    assert jnp.max(jnp.abs(out - out_ref)) < 5e-2
    assert jnp.max(jnp.abs(out_only - out_ref)) < 5e-2

    print("KERNEL_OK")
</pallas_src>

<mosaic_0001>
module attributes {stable_mosaic.version = 11 : i64} {
  func.func @_fused_kernel(%arg0: i32, %arg1: memref<32x192xbf16, #tpu.memory_space<vmem>>, %arg2: memref<192x192xbf16, #tpu.memory_space<vmem>>, %arg3: memref<192x512xbf16, #tpu.memory_space<vmem>>, %arg4: memref<1x512xf32, #tpu.memory_space<vmem>>, %arg5: memref<512x128xbf16, #tpu.memory_space<vmem>>, %arg6: memref<1x128xf32, #tpu.memory_space<vmem>>, %arg7: memref<2x512xf32, #tpu.memory_space<vmem>>, %arg8: memref<2x128xf32, #tpu.memory_space<vmem>>) attributes {dimension_semantics = [#tpu.dimension_semantics<parallel>], iteration_bounds = array<i64: 1>, scalar_prefetch = 0 : i64, scratch_operands = 0 : i64, tpu.core_type = #tpu.core_type<tc>, window_params = [{transform_indices = @transform_0, window_bounds = array<i64: 32, 192>}, {pipeline_mode = #tpu.pipeline_mode<synchronous>, transform_indices = @transform_1, window_bounds = array<i64: 192, 192>}, {pipeline_mode = #tpu.pipeline_mode<synchronous>, transform_indices = @transform_2, window_bounds = array<i64: 192, 512>}, {pipeline_mode = #tpu.pipeline_mode<synchronous>, transform_indices = @transform_3, window_bounds = array<i64: 1, 512>}, {pipeline_mode = #tpu.pipeline_mode<synchronous>, transform_indices = @transform_4, window_bounds = array<i64: 512, 128>}, {pipeline_mode = #tpu.pipeline_mode<synchronous>, transform_indices = @transform_5, window_bounds = array<i64: 1, 128>}, {transform_indices = @transform_6, window_bounds = array<i64: 2, 512>}, {transform_indices = @transform_7, window_bounds = array<i64: 2, 128>}]} {
    %c0 = arith.constant 0 : index
    %c0_0 = arith.constant 0 : index
    %0 = vector.load %arg1[%c0, %c0_0] : memref<32x192xbf16, #tpu.memory_space<vmem>>, vector<32x192xbf16>
    %c0_1 = arith.constant 0 : index
    %c0_2 = arith.constant 0 : index
    %1 = vector.load %arg2[%c0_1, %c0_2] : memref<192x192xbf16, #tpu.memory_space<vmem>>, vector<192x192xbf16>
    %cst = arith.constant dense<0.000000e+00> : vector<32x192xf32>
    %2 = tpu.matmul %0, %1, %cst {dimension_numbers = #tpu.dot_dimension_numbers<[1], [0], [0], [1], [0, 0, 1, 1], [], []>} : vector<32x192xbf16>, vector<192x192xbf16>, vector<32x192xf32> -> vector<32x192xf32>
    %3 = math.tanh %2 : vector<32x192xf32>
    %4 = arith.extf %0 : vector<32x192xbf16> to vector<32x192xf32>
    %5 = arith.subf %4, %3 : vector<32x192xf32>
    %6 = arith.truncf %5 : vector<32x192xf32> to vector<32x192xbf16>
    %c0_3 = arith.constant 0 : index
    %c0_4 = arith.constant 0 : index
    %7 = vector.load %arg3[%c0_3, %c0_4] : memref<192x512xbf16, #tpu.memory_space<vmem>>, vector<192x512xbf16>
    %cst_5 = arith.constant dense<0.000000e+00> : vector<32x512xf32>
    %8 = tpu.matmul %6, %7, %cst_5 {dimension_numbers = #tpu.dot_dimension_numbers<[1], [0], [0], [1], [0, 0, 1, 1], [], []>} : vector<32x192xbf16>, vector<192x512xbf16>, vector<32x512xf32> -> vector<32x512xf32>
    %c0_6 = arith.constant 0 : index
    %c0_7 = arith.constant 0 : index
    %9 = vector.load %arg4[%c0_6, %c0_7] : memref<1x512xf32, #tpu.memory_space<vmem>>, vector<1x512xf32>
    %10 = vector.broadcast %9 : vector<1x512xf32> to vector<32x512xf32>
    %11 = arith.addf %8, %10 : vector<32x512xf32>
    %cst_8 = arith.constant 0.000000e+00 : f32
    %12 = vector.broadcast %cst_8 : f32 to vector<32x512xf32>
    %13 = arith.maximumf %11, %12 : vector<32x512xf32>
    %14 = vector.shape_cast %13 : vector<32x512xf32> to vector<2x16x512xf32>
    %cst_9 = arith.constant dense<0.000000e+00> : vector<2x512xf32>
    %15 = vector.multi_reduction <add>, %14, %cst_9 [1] : vector<2x16x512xf32> to vector<2x512xf32>
    %cst_10 = arith.constant 6.250000e-02 : f32
    %16 = vector.broadcast %cst_10 : f32 to vector<2x512xf32>
    %17 = arith.mulf %15, %16 : vector<2x512xf32>
    %c0_11 = arith.constant 0 : index
    %c0_12 = arith.constant 0 : index
    %18 = vector.load %arg7[%c0_11, %c0_12] : memref<2x512xf32, #tpu.memory_space<vmem>>, vector<2x512xf32>
    tpu.vector_store %arg7[%c0_11, %c0_12], %17 {strides = array<i32>} : memref<2x512xf32, #tpu.memory_space<vmem>>, vector<2x512xf32>,
    %19 = arith.truncf %17 : vector<2x512xf32> to vector<2x512xbf16>
    %c0_13 = arith.constant 0 : index
    %c0_14 = arith.constant 0 : index
    %20 = vector.load %arg5[%c0_13, %c0_14] : memref<512x128xbf16, #tpu.memory_space<vmem>>, vector<512x128xbf16>
    %cst_15 = arith.constant dense<0.000000e+00> : vector<2x128xf32>
    %21 = tpu.matmul %19, %20, %cst_15 {dimension_numbers = #tpu.dot_dimension_numbers<[1], [0], [0], [1], [0, 0, 1, 1], [], []>} : vector<2x512xbf16>, vector<512x128xbf16>, vector<2x128xf32> -> vector<2x128xf32>
    %c0_16 = arith.constant 0 : index
    %c0_17 = arith.constant 0 : index
    %22 = vector.load %arg6[%c0_16, %c0_17] : memref<1x128xf32, #tpu.memory_space<vmem>>, vector<1x128xf32>
    %23 = vector.broadcast %22 : vector<1x128xf32> to vector<2x128xf32>
    %24 = arith.addf %21, %23 : vector<2x128xf32>
    %c0_18 = arith.constant 0 : index
    %c0_19 = arith.constant 0 : index
    %25 = vector.load %arg8[%c0_18, %c0_19] : memref<2x128xf32, #tpu.memory_space<vmem>>, vector<2x128xf32>
    tpu.vector_store %arg8[%c0_18, %c0_19], %24 {strides = array<i32>} : memref<2x128xf32, #tpu.memory_space<vmem>>, vector<2x128xf32>,
    return
  }
  func.func @transform_0(%arg0: i32) -> (i32, i32) {
    %c0_i32 = arith.constant 0 : i32
    %c0_i32_0 = arith.constant 0 : i32
    return %arg0, %c0_i32 : i32, i32
  }
  func.func @transform_1(%arg0: i32) -> (i32, i32) {
    %c0_i32 = arith.constant 0 : i32
    %c0_i32_0 = arith.constant 0 : i32
    %c0_i32_1 = arith.constant 0 : i32
    return %c0_i32, %c0_i32_0 : i32, i32
  }
  func.func @transform_2(%arg0: i32) -> (i32, i32) {
    %c0_i32 = arith.constant 0 : i32
    %c0_i32_0 = arith.constant 0 : i32
    %c0_i32_1 = arith.constant 0 : i32
    return %c0_i32, %c0_i32_0 : i32, i32
  }
  func.func @transform_3(%arg0: i32) -> (i32, i32) {
    %c0_i32 = arith.constant 0 : i32
    %c0_i32_0 = arith.constant 0 : i32
    %c0_i32_1 = arith.constant 0 : i32
    return %c0_i32, %c0_i32_0 : i32, i32
  }
  func.func @transform_4(%arg0: i32) -> (i32, i32) {
    %c0_i32 = arith.constant 0 : i32
    %c0_i32_0 = arith.constant 0 : i32
    %c0_i32_1 = arith.constant 0 : i32
    return %c0_i32, %c0_i32_0 : i32, i32
  }
  func.func @transform_5(%arg0: i32) -> (i32, i32) {
    %c0_i32 = arith.constant 0 : i32
    %c0_i32_0 = arith.constant 0 : i32
    %c0_i32_1 = arith.constant 0 : i32
    return %c0_i32, %c0_i32_0 : i32, i32
  }
  func.func @transform_6(%arg0: i32) -> (i32, i32) {
    %c0_i32 = arith.constant 0 : i32
    %c0_i32_0 = arith.constant 0 : i32
    return %arg0, %c0_i32 : i32, i32
  }
  func.func @transform_7(%arg0: i32) -> (i32, i32) {
    %c0_i32 = arith.constant 0 : i32
    %c0_i32_0 = arith.constant 0 : i32
    return %arg0, %c0_i32 : i32, i32
  }
}

</mosaic_0001>

<bundles_post_ra>
// kernel: tpu_custom_call.1
= control target key start
LH: loop header
LB: loop body
LE: loop exit
PB: predicated region body
PF: predicated region fallthrough
CT: control target
= control target key end

     0   :  { %13 = vsyncpa [#allocation3], 0  ;;  %s1898_s0 = inlined_call_operand.hbm [shape: bf16[32,192], index: 0, kind: input, shape index: {}]   ;;  %s1899_s1 = inlined_call_operand.hbm [shape: bf16[192,192], index: 1, kind: input, shape index: {}]   ;;  %s1900_s2 = inlined_call_operand.hbm [shape: bf16[192,512], index: 2, kind: input, shape index: {}]   ;;  %s1901_s3 = inlined_call_operand.vmem [shape: f32[1,512], index: 3, kind: input, shape index: {}]   ;;  %s1902_s4 = inlined_call_operand.hbm [shape: bf16[512,128], index: 4, kind: input, shape index: {}]   ;;  %s1903_s5 = inlined_call_operand.vmem [shape: f32[1,128], index: 5, kind: input, shape index: {}]   ;;  %s1904_s6 = inlined_call_operand.hbm [shape: f32[2,512], index: 6, kind: output, shape index: {0}]   ;;  %s1905_s7 = inlined_call_operand.hbm [shape: f32[2,128], index: 7, kind: output, shape index: {1}]  }
   0x1   :  { %14 = vsyncpa [#allocation6], 0 }
   0x2   :  { %15 = vsyncpa [#allocation9], 0 }
   0x3   :  { %16 = vsyncpa [#allocation4], 0 }
   0x4   :  { %17 = vsyncpa [#allocation12], 0  ;;  %s1769_s24 = smov [#allocation5]   ;;  %s1770_s26 = smov [#allocation2]  }
   0x5   :  { %s35_s25 = sshll.u32 %s1769_s24, 4  ;;  %s23_s27 = sshll.u32 %s1770_s26, 4  ;;  %s36_s25 = int_to_ptr.vmem [resolvable:$true] %s35_s25  ;;  %s24_s27 = int_to_ptr.vmem [resolvable:$true] %s23_s27 }
   0x6   :  { %s1647_s28 = scalar_lea.vmem %s36_s25, 3072  ;;  %p1652_p1 = scmp.lt.s32.totalorder %s36_s25, %s36_s25 }
   0x7   :  { %p1648_p0 = scmp.ne.s32.totalorder %s36_s25, %s1647_s28  ;;  %p1653_p2 = scmp.lt.s32.totalorder %s1647_s28, %s1647_s28 }
   0x9   :  { %p1654_p3 = por %p1653_p2, %p1652_p1 }
   0xb   :  { %p1655_p4 = pnand %p1654_p3, %p1648_p0 }
   0xd   :  { %1658 = shalt.err (!%p1655_p4)
}
   0xe   :  { %s1771_s29 = smov 128   ;;  %s1772_s30 = smov 8  }
   0xf   :  { %41 = dma.hbm_to_vmem [thread:$0]  %s1899_s1, 3072, %s36_s25, [#allocation6], %s1771_s29, %s1771_s29, %s1772_s30  }
  0x10   :  { %s1667_s10 = scalar_lea.vmem %s24_s27, 512  ;;  %p1672_p6 = scmp.lt.s32.totalorder %s24_s27, %s24_s27 }
  0x11   :  { %p1668_p5 = scmp.ne.s32.totalorder %s24_s27, %s1667_s10  ;;  %p1673_p7 = scmp.lt.s32.totalorder %s1667_s10, %s1667_s10 }
  0x13   :  { %p1674_p8 = por %p1673_p7, %p1672_p6 }
  0x15   :  { %p1675_p9 = pnand %p1674_p8, %p1668_p5 }
  0x17   :  { %1678 = shalt.err (!%p1675_p9)
}
  0x18   :  { %29 = dma.hbm_to_vmem [thread:$0]  %s1898_s0, 512, %s24_s27, [#allocation3], %s1771_s29, %s1771_s29, %s1772_s30  }
  0x19   :  { %s1773_s13 = smov [#allocation7]  }
  0x1a   :  { %s47_s14 = sshll.u32 %s1773_s13, 4  ;;  %s48_s14 = int_to_ptr.vmem [resolvable:$true] %s47_s14 }
  0x1b   :  { %s1687_s15 = scalar_lea.vmem %s48_s14, 6144  ;;  %p1692_p11 = scmp.lt.s32.totalorder %s48_s14, %s48_s14 }
  0x1c   :  { %p1688_p10 = scmp.ne.s32.totalorder %s48_s14, %s1687_s15  ;;  %p1693_p12 = scmp.lt.s32.totalorder %s1687_s15, %s1687_s15 }
  0x1e   :  { %p1694_p13 = por %p1693_p12, %p1692_p11 }
  0x20   :  { %p1695_p0 = pnand %p1694_p13, %p1688_p10 }
  0x22   :  { %1698 = shalt.err (!%p1695_p0)
}
  0x23   :  { %s1774_s1 = smov 256   ;;  %s1775_s16 = smov 16  }
  0x24   :  { %53 = dma.hbm_to_vmem [thread:$0]  %s1900_s2, 6144, %s48_s14, [#allocation6], %s1774_s1, %s1774_s1, %s1775_s16  }
  0x25   :  { %s1776_s19 = smov [#allocation8]  }
  0x26   :  { %s61_s20 = sshll.u32 %s1776_s19, 4  ;;  %s62_s20 = int_to_ptr.vmem [resolvable:$true] %s61_s20 }
  0x27   :  { %s1707_s0 = scalar_lea.vmem %s62_s20, 4096  ;;  %p1712_p2 = scmp.lt.s32.totalorder %s62_s20, %s62_s20 }
  0x28   :  { %p1708_p1 = scmp.ne.s32.totalorder %s62_s20, %s1707_s0  ;;  %p1713_p3 = scmp.lt.s32.totalorder %s1707_s0, %s1707_s0 }
  0x2a   :  { %p1714_p4 = por %p1713_p3, %p1712_p2 }
  0x2c   :  { %p1715_p5 = pnand %p1714_p4, %p1708_p1 }
  0x2e   :  { %1718 = shalt.err (!%p1715_p5)
}
  0x2f   :  { %s1777_s21 = smov 64   ;;  %s1778_s22 = smov 4  }
  0x30   :  { %67 = dma.hbm_to_vmem [thread:$0]  %s1902_s4, 4096, %s62_s20, [#allocation9], %s1777_s21, %s1777_s21, %s1778_s22  }
  0x31   :  { %1759 = dma.done.wait [#allocation3], 512  }
  0x32   :  { %1760 = vsyncadd [#allocation3], 4294966784 }
  0x33   :  { %1761 = dma.done.wait [#allocation6], 9216  }
  0x34   :  { %1762 = vsyncadd [#allocation6], 4294958080 }
  0x35   :  { %1763 = dma.done.wait [#allocation9], 4096  }
  0x36   :  { %1764 = vsyncadd [#allocation9], 4294963200  ;;  %v1479_v0 = vld [vmem:[#allocation5 + $0x74] ss:$8 sps:$4 sm:$0xff]   ;;  %v1481_v1 = vld [vmem:[#allocation5 + $0x70] ss:$8 sps:$4 sm:$0xff]  }
  0x37   :  { %256 = vmatprep.subr.bf16.mxu0 %v1479_v0  ;;  %v1482_v2 = vld [vmem:[#allocation5 + $0x64] ss:$8 sps:$4 sm:$0xff]   ;;  %v1484_v3 = vld [vmem:[#allocation5 + $0x60] ss:$8 sps:$4 sm:$0xff]   ;;  %v1485_v4 = vld [vmem:[#allocation5 + $0x54] ss:$8 sps:$4 sm:$0xff]  }
  0x38   :  { %257 = vmatpush1.bf16.msra.mxu0 %v1481_v1  ;;  %v1487_v5 = vld [vmem:[#allocation5 + $0x50] ss:$8 sps:$4 sm:$0xff]   ;;  %v1488_v6 = vld [vmem:[#allocation5 + $0x44] ss:$8 sps:$4 sm:$0xff]   ;;  %v1490_v7 = vld [vmem:[#allocation5 + $0x40] ss:$8 sps:$4 sm:$0xff]  }
  0x39   :  { %258 = vmatprep.subr.bf16.mxu0 %v1482_v2  ;;  %v1491_v8 = vld [vmem:[#allocation5 + $0x34] ss:$8 sps:$4 sm:$0xff]   ;;  %v1493_v9 = vld [vmem:[#allocation5 + $0x30] ss:$8 sps:$4 sm:$0xff]   ;;  %v1494_v10 = vld [vmem:[#allocation5 + $0x24] ss:$8 sps:$4 sm:$0xff]  }
  0x3a   :  { %v1834_v11 = vld [vmem:[#allocation2] sm:$0xff]  ;;  %v1836_v12 = vld [vmem:[#allocation2 + $0x8] sm:$0xff]  ;;  %vm249_vm0 = vcmask 523264   ;;  %v1497_v16 = vld [vmem:[#allocation5 + $0x14] ss:$8 sps:$4 sm:$0xff]   ;;  %vm886_vm1 = vcmask 1041409  }
  0x3b   :  { %v1308_v13 = vcombine.high %v1834_v11, %v1836_v12  ;;  %v1519_v14 = vld [vmem:[#allocation7 + $0xe4] ss:$16 sps:$4 sm:$0xff]   ;;  %v1496_v15 = vld [vmem:[#allocation5 + $0x20] ss:$8 sps:$4 sm:$0xff]   ;;  %v1499_v19 = vld [vmem:[#allocation5 + $0x10] ss:$8 sps:$4 sm:$0xff]   ;;  %v1307_v43 = vcombine.low %v1834_v11, %v1836_v12 }
  0x3c   :  { %259 = vmatpush1.bf16.msra.mxu0 %v1484_v3  ;;  %v1524_v17 = vld [vmem:[#allocation7 + $0xe0] ss:$16 sps:$4 sm:$0xff]   ;;  %653 = vmatprep.subr.bf16.mxu1 %v1519_v14  ;;  %v1525_v18 = vld [vmem:[#allocation7 + $0xc4] ss:$16 sps:$4 sm:$0xff]   ;;  %v1843_v40 = vld [vmem:[#allocation2 + $0x18] sm:$0xff]  ;;  %vm888_vm2 = vcmask 1043459  }
  0x3d   :  { %260 = vmatprep.subr.bf16.mxu0 %v1485_v4  ;;  %1335 = vmatprep.mubr.msk.bf16.mxu0 %vm249_vm0, %v1308_v13  ;;  %v1530_v20 = vld [vmem:[#allocation7 + $0xc0] ss:$16 sps:$4 sm:$0xff]   ;;  %v1531_v21 = vld [vmem:[#allocation7 + $0xa4] ss:$16 sps:$4 sm:$0xff]   ;;  %v1523_v41 = vld [vmem:[#allocation7 + $0xec] ss:$16 sps:$4 sm:$0xff]  }
  0x3e   :  { %654 = vmatpush1.bf16.msra.mxu1 %v1524_v17  ;;  %v1500_v22 = vld [vmem:[#allocation5 + $0x4] ss:$8 sps:$4 sm:$0xff]   ;;  %v1536_v23 = vld [vmem:[#allocation7 + $0xa0] ss:$16 sps:$4 sm:$0xff]   ;;  %v1503_v26 = vld [vmem:[#allocation5 + $0xb4] ss:$8 sps:$4 sm:$0xff]  }
  0x3f   :  { %655 = vmatprep.subr.bf16.mxu1 %v1525_v18  ;;  %v1537_v24 = vld [vmem:[#allocation7 + $0x84] ss:$16 sps:$4 sm:$0xff]   ;;  %v1502_v25 = vld [vmem:[#allocation5] ss:$8 sps:$4 sm:$0xff]   ;;  %v1505_v29 = vld [vmem:[#allocation5 + $0xb0] ss:$8 sps:$4 sm:$0xff]  }
  0x40   :  { %261 = vmatpush1.bf16.msra.mxu0 %v1487_v5  ;;  %v1542_v27 = vld [vmem:[#allocation7 + $0x80] ss:$16 sps:$4 sm:$0xff]   ;;  %v1543_v28 = vld [vmem:[#allocation7 + $0x64] ss:$16 sps:$4 sm:$0xff]   ;;  %v1521_v42 = vld [vmem:[#allocation7 + $0xe8] ss:$16 sps:$4 sm:$0xff]  }
  0x41   :  { %262 = vmatprep.subr.bf16.mxu0 %v1488_v6  ;;  %v1506_v30 = vld [vmem:[#allocation5 + $0xa4] ss:$8 sps:$4 sm:$0xff]   ;;  %v1548_v31 = vld [vmem:[#allocation7 + $0x60] ss:$16 sps:$4 sm:$0xff]   ;;  %v1509_v34 = vld [vmem:[#allocation5 + $0x94] ss:$8 sps:$4 sm:$0xff]  }
  0x42   :  { %656 = vmatpush1.bf16.msra.mxu1 %v1530_v20  ;;  %v1508_v32 = vld [vmem:[#allocation5 + $0xa0] ss:$8 sps:$4 sm:$0xff]   ;;  %v1549_v33 = vld [vmem:[#allocation7 + $0x44] ss:$16 sps:$4 sm:$0xff]   ;;  %v1511_v36 = vld [vmem:[#allocation5 + $0x90] ss:$8 sps:$4 sm:$0xff]  }
  0x43   :  { %657 = vmatprep.subr.bf16.mxu1 %v1531_v21  ;;  %v1554_v35 = vld [vmem:[#allocation7 + $0x40] ss:$16 sps:$4 sm:$0xff]   ;;  %v1512_v37 = vld [vmem:[#allocation5 + $0x84] ss:$8 sps:$4 sm:$0xff]   ;;  %v1527_v46 = vld [vmem:[#allocation7 + $0xc8] ss:$16 sps:$4 sm:$0xff]  }
  0x44   :  { %263 = vmatpush1.bf16.msra.mxu0 %v1490_v7  ;;  %v1514_v38 = vld [vmem:[#allocation5 + $0x80] ss:$8 sps:$4 sm:$0xff]   ;;  %v1841_v39 = vld [vmem:[#allocation2 + $0x10] sm:$0xff]  ;;  %v1529_v44 = vld [vmem:[#allocation7 + $0xcc] ss:$16 sps:$4 sm:$0xff]   ;;  %vm890_vm3 = vcmask 1045509  }
  0x45   :  { %264 = vmatprep.subr.bf16.mxu0 %v1491_v8  ;;  %v1310_v45 = vcombine.high %v1841_v39, %v1843_v40  ;;  %v1535_v47 = vld [vmem:[#allocation7 + $0xac] ss:$16 sps:$4 sm:$0xff]   ;;  %v1533_v48 = vld [vmem:[#allocation7 + $0xa8] ss:$16 sps:$4 sm:$0xff]   ;;  %v1309_v49 = vcombine.low %v1841_v39, %v1843_v40  ;;  %v1555_v56 = vld [vmem:[#allocation7 + $0x24] ss:$16 sps:$4 sm:$0xff]  }
  0x46   :  { %658 = vmatpush1.bf16.msra.mxu1 %v1536_v23  ;;  %v1541_v50 = vld [vmem:[#allocation7 + $0x8c] ss:$16 sps:$4 sm:$0xff]   ;;  %v1539_v51 = vld [vmem:[#allocation7 + $0x88] ss:$16 sps:$4 sm:$0xff]   ;;  %v1560_v59 = vld [vmem:[#allocation7 + $0x20] ss:$16 sps:$4 sm:$0xff]  }
  0x47   :  { %659 = vmatprep.subr.bf16.mxu1 %v1537_v24  ;;  %v1547_v52 = vld [vmem:[#allocation7 + $0x6c] ss:$16 sps:$4 sm:$0xff]   ;;  %v1545_v53 = vld [vmem:[#allocation7 + $0x68] ss:$16 sps:$4 sm:$0xff]   ;;  %v1561_v60 = vld [vmem:[#allocation7 + $0x4] ss:$16 sps:$4 sm:$0xff]  }
  0x48   :  { %265 = vmatpush1.bf16.msra.mxu0 %v1493_v9  ;;  %v1553_v54 = vld [vmem:[#allocation7 + $0x4c] ss:$16 sps:$4 sm:$0xff]   ;;  %v1551_v55 = vld [vmem:[#allocation7 + $0x48] ss:$16 sps:$4 sm:$0xff]   ;;  %v1566_v63 = vld [vmem:[#allocation7] ss:$16 sps:$4 sm:$0xff]  }
  0x49   :  { %266 = vmatprep.subr.bf16.mxu0 %v1494_v10  ;;  %v1559_v57 = vld [vmem:[#allocation7 + $0x2c] ss:$16 sps:$4 sm:$0xff]   ;;  %v1557_v58 = vld [vmem:[#allocation7 + $0x28] ss:$16 sps:$4 sm:$0xff]   ;;  %v1567_v0 = vld [vmem:[#allocation7 + $0x164] ss:$16 sps:$4 sm:$0xff]  }
  0x4a   :  { %660 = vmatpush1.bf16.msra.mxu1 %v1542_v27  ;;  %v1565_v61 = vld [vmem:[#allocation7 + $0xc] ss:$16 sps:$4 sm:$0xff]   ;;  %v1563_v62 = vld [vmem:[#allocation7 + $0x8] ss:$16 sps:$4 sm:$0xff]   ;;  %v1572_v3 = vld [vmem:[#allocation7 + $0x160] ss:$16 sps:$4 sm:$0xff]  }
  0x4b   :  { %661 = vmatprep.subr.bf16.mxu1 %v1543_v28  ;;  %v1571_v1 = vld [vmem:[#allocation7 + $0x16c] ss:$16 sps:$4 sm:$0xff]   ;;  %v1569_v2 = vld [vmem:[#allocation7 + $0x168] ss:$16 sps:$4 sm:$0xff]   ;;  %v1573_v4 = vld [vmem:[#allocation7 + $0x144] ss:$16 sps:$4 sm:$0xff]   ;;  %v318_v28 = vunpack.c.h.bf16 %v1834_v11 }
  0x4c   :  { %267 = vmatpush1.bf16.msra.mxu0 %v1496_v15  ;;  %v1577_v5 = vld [vmem:[#allocation7 + $0x14c] ss:$16 sps:$4 sm:$0xff]   ;;  %v1575_v6 = vld [vmem:[#allocation7 + $0x148] ss:$16 sps:$4 sm:$0xff]   ;;  %v1578_v7 = vld [vmem:[#allocation7 + $0x140] ss:$16 sps:$4 sm:$0xff]  }
  0x4d   :  { %268 = vmatprep.subr.bf16.mxu0 %v1497_v16  ;;  %v1579_v8 = vld [vmem:[#allocation7 + $0x124] ss:$16 sps:$4 sm:$0xff]   ;;  %v1581_v9 = vld [vmem:[#allocation7 + $0x128] ss:$16 sps:$4 sm:$0xff]   ;;  %v1583_v10 = vld [vmem:[#allocation7 + $0x12c] ss:$16 sps:$4 sm:$0xff]  }
  0x4e   :  { %662 = vmatpush1.bf16.msra.mxu1 %v1548_v31  ;;  %v1584_v13 = vld [vmem:[#allocation7 + $0x120] ss:$16 sps:$4 sm:$0xff]   ;;  %v1585_v14 = vld [vmem:[#allocation7 + $0x104] ss:$16 sps:$4 sm:$0xff]   ;;  %v1589_v15 = vld [vmem:[#allocation7 + $0x10c] ss:$16 sps:$4 sm:$0xff]   ;;  %v317_v31 = vunpack.c.l.bf16 %v1834_v11 }
  0x4f   :  { %663 = vmatprep.subr.bf16.mxu1 %v1549_v33  ;;  %v1587_v16 = vld [vmem:[#allocation7 + $0x108] ss:$16 sps:$4 sm:$0xff]   ;;  %v1590_v17 = vld [vmem:[#allocation7 + $0x100] ss:$16 sps:$4 sm:$0xff]   ;;  %vm892_vm4 = vcmask 1047559  }
  0x50   :  { %269 = vmatpush1.bf16.msra.mxu0 %v1499_v19 }
  0x51   :  { %270 = vmatprep.subr.bf16.mxu0 %v1500_v22 }
  0x52   :  { %664 = vmatpush1.bf16.msra.mxu1 %v1554_v35 }
  0x53   :  { %665 = vmatprep.subr.bf16.mxu1 %v1555_v56  ;;  %v1595_v56 = vld [vmem:[#allocation8 + $0x68] sm:$0xff]  }
  0x54   :  { %271 = vmatpush1.bf16.msra.mxu0 %v1502_v25 }
  0x55   :  { %280 = vmatprep.subr.bf16.mxu0 %v1503_v26  ;;  %v319_v26 = vunpack.c.l.bf16 %v1836_v12 }
  0x56   :  { %666 = vmatpush1.bf16.msra.mxu1 %v1560_v59  ;;  %v1598_v59 = vld [vmem:[#allocation8 + $0x20] sm:$0xff]  }
  0x57   :  { %667 = vmatprep.subr.bf16.mxu1 %v1561_v60  ;;  %v1599_v60 = vld [vmem:[#allocation8 + $0x58] sm:$0xff]  }
  0x58   :  { %281 = vmatpush2.bf16.msra.mxu0 %v1505_v29  ;;  %v320_v29 = vunpack.c.h.bf16 %v1836_v12  ;;  %v322_v12 = vunpack.c.h.bf16 %v1841_v39 }
  0x59   :  { %282 = vmatprep.subr.bf16.mxu0 %v1506_v30 }
  0x5a   :  { %668 = vmatpush1.bf16.msra.mxu1 %v1566_v63  ;;  %v1602_v63 = vld [vmem:[#allocation8 + $0x10] sm:$0xff]  }
  0x5b   :  { %677 = vmatprep.subr.bf16.mxu1 %v1567_v0  ;;  %v1603_v0 = vld [vmem:[#allocation8 + $0x48] sm:$0xff]  }
  0x5c   :  { %283 = vmatpush2.bf16.msra.mxu0 %v1508_v32 }
  0x5d   :  { %284 = vmatprep.subr.bf16.mxu0 %v1509_v34 }
  0x5e   :  { %678 = vmatpush2.bf16.msra.mxu1 %v1572_v3  ;;  %v1606_v3 = vld [vmem:[#allocation8] sm:$0xff]  }
  0x5f   :  { %679 = vmatprep.subr.bf16.mxu1 %v1573_v4  ;;  %v1607_v4 = vld [vmem:[#allocation8 + $0xf8] sm:$0xff]  }
  0x60   :  { %285 = vmatpush2.bf16.msra.mxu0 %v1511_v36 }
  0x61   :  { %286 = vmatprep.subr.bf16.mxu0 %v1512_v37 }
  0x62   :  { %680 = vmatpush2.bf16.msra.mxu1 %v1578_v7 }
  0x63   :  { %681 = vmatprep.subr.bf16.mxu1 %v1579_v8 }
  0x64   :  { %287 = vmatpush2.bf16.msra.mxu0 %v1514_v38 }
  0x65   :  { %706 = vmatprep.subr.bf16.mxu0 %v1523_v41 }
  0x66   :  { %682 = vmatpush2.bf16.msra.mxu1 %v1584_v13 }
  0x67   :  { %289 = vmatmul.mubr.bf16.vlgmr.msra.gmra.mxu0 %v1307_v43  ;;  %683 = vmatprep.subr.bf16.mxu1 %v1585_v14 }
  0x68   :  { %1336 = vmatprep.mubr.msk.bf16.mxu0 %vm249_vm0, %v1310_v45  ;;  %707 = vmatpush1.bf16.msra.mxu0 %v1521_v42  ;;  %v323_v42 = vunpack.c.l.bf16 %v1843_v40  ;;  %v321_v45 = vunpack.c.l.bf16 %v1841_v39  ;;  %v1594_v39 = vld [vmem:[#allocation8 + $0x30] sm:$0xff]  }
  0x69   :  { %708 = vmatprep.subr.bf16.mxu0 %v1529_v44  ;;  %v324_v44 = vunpack.c.h.bf16 %v1843_v40  ;;  %v1591_v40 = vld [vmem:[#allocation8 + $0x78] sm:$0xff]  }
  0x6a   :  { %684 = vmatpush2.bf16.msra.mxu1 %v1590_v17 }
  0x6b   :  { %1422 = vmatprep.subr.bf16.mxu1 %v1591_v40 }
  0x6c   :  { %709 = vmatpush1.bf16.msra.mxu0 %v1527_v46 }
  0x6d   :  { %710 = vmatprep.subr.bf16.mxu0 %v1535_v47 }
  0x6f   :  { %299 = vmatmul.mubr.bf16.gmra.mxu0 %v1309_v49 }
  0x70   :  { %711 = vmatpush1.bf16.msra.mxu0 %v1533_v48 }
  0x71   :  { %712 = vmatprep.subr.bf16.mxu0 %v1541_v50 }
  0x74   :  { %713 = vmatpush1.bf16.msra.mxu0 %v1539_v51 }
  0x75   :  { %714 = vmatprep.subr.bf16.mxu0 %v1547_v52 }
  0x78   :  { %715 = vmatpush1.bf16.msra.mxu0 %v1545_v53 }
  0x79   :  { %716 = vmatprep.subr.bf16.mxu0 %v1553_v54  ;;  %v1592_v54 = vld [vmem:[#allocation8 + $0x38] sm:$0xff]  }
  0x7c   :  { %717 = vmatpush1.bf16.msra.mxu0 %v1551_v55  ;;  %v1593_v55 = vld [vmem:[#allocation8 + $0x70] sm:$0xff]  }
  0x7d   :  { %718 = vmatprep.subr.bf16.mxu0 %v1559_v57  ;;  %v1596_v57 = vld [vmem:[#allocation8 + $0x28] sm:$0xff]  }
  0x80   :  { %719 = vmatpush1.bf16.msra.mxu0 %v1557_v58  ;;  %v1597_v58 = vld [vmem:[#allocation8 + $0x60] sm:$0xff]  }
  0x81   :  { %720 = vmatprep.subr.bf16.mxu0 %v1565_v61  ;;  %v1600_v61 = vld [vmem:[#allocation8 + $0x18] sm:$0xff]  }
  0x84   :  { %721 = vmatpush1.bf16.msra.mxu0 %v1563_v62  ;;  %v1601_v62 = vld [vmem:[#allocation8 + $0x50] sm:$0xff]  }
  0x85   :  { %730 = vmatprep.subr.bf16.mxu0 %v1571_v1  ;;  %v1604_v1 = vld [vmem:[#allocation8 + $0x8] sm:$0xff]  }
  0x88   :  { %731 = vmatpush2.bf16.msra.mxu0 %v1569_v2  ;;  %v1605_v2 = vld [vmem:[#allocation8 + $0x40] sm:$0xff]  }
  0x89   :  { %732 = vmatprep.subr.bf16.mxu0 %v1577_v5  ;;  %v387_v5 = vlaneseq }
  0x8c   :  { %733 = vmatpush2.bf16.msra.mxu0 %v1575_v6  ;;  %v1864_v6 = vshrl.u32 %v387_v5, 7 }
  0x8d   :  { %734 = vmatprep.subr.bf16.mxu0 %v1583_v10 }
  0x8e   :  { %v389_v7 = vsub.s32 0, %v1864_v6  ;;  %v397_v8 = vsub.s32 2, %v1864_v6  ;;  %v393_v10 = vsub.s32 1, %v1864_v6  ;;  %v401_v13 = vsub.s32 3, %v1864_v6 }
  0x90   :  { %735 = vmatpush2.bf16.msra.mxu0 %v1581_v9  ;;  %v385_v9 = vld [vmem:[%s1901_s3] sm:$0xf]  ;;  %s1780_s3 = smov [#allocation10]  }
  0x91   :  { %736 = vmatprep.subr.bf16.mxu0 %v1589_v15  ;;  %v390_v14 = vrot.slane %v385_v9, %v389_v7  ;;  %v398_v15 = vrot.slane %v385_v9, %v397_v8  ;;  %s1282_s25 = sshll.u32 %s1780_s3, 4  ;;  %s1283_s25 = int_to_ptr.vmem [resolvable:$true] %s1282_s25 }
  0x92   :  { %s1719_s26 = scalar_lea.vmem %s1283_s25, 128  ;;  %p1724_p7 = scmp.lt.s32.totalorder %s1283_s25, %s1283_s25 }
  0x93   :  { %p1720_p6 = scmp.ne.s32.totalorder %s1283_s25, %s1719_s26  ;;  %p1725_p8 = scmp.lt.s32.totalorder %s1719_s26, %s1719_s26 }
  0x94   :  { %737 = vmatpush2.bf16.msra.mxu0 %v1587_v16 }
  0x95   :  { %p1726_p9 = por %p1725_p8, %p1724_p7 }
  0x97   :  { %p1727_p10 = pnand %p1726_p9, %p1720_p6 }
 0x127   :  { %v290_v18 = vpop.f32.mrf.mxu0 }
 0x129   :  { %v292_v19 = vpop.f32.mrf.mxu0 }
 0x12a   :  { %1623 = vtanh.f32 %v292_v19  ;;  %v402_v19 = vrot.slane %v385_v9, %v401_v13 }
 0x12b   :  { %v294_v20 = vpop.f32.mrf.mxu0 }
 0x12c   :  { %1625 = vtanh.f32 %v294_v20 }
 0x12d   :  { %1627 = vtanh.f32 %v290_v18  ;;  %v296_v21 = vpop.f32.mrf.mxu0  ;;  %v394_v18 = vrot.slane %v385_v9, %v393_v10 }
 0x12e   :  { %1629 = vtanh.f32 %v296_v21 }
 0x12f   :  { %v300_v22 = vpop.f32.mrf.mxu0 }
 0x131   :  { %v302_v23 = vpop.f32.mrf.mxu0 }
 0x132   :  { %1631 = vtanh.f32 %v302_v23 }
 0x133   :  { %v304_v24 = vpop.f32.mrf.mxu0 }
 0x134   :  { %1633 = vtanh.f32 %v304_v24 }
 0x135   :  { %1635 = vtanh.f32 %v300_v22  ;;  %v306_v25 = vpop.f32.mrf.mxu0 }
 0x136   :  { %1637 = vtanh.f32 %v306_v25 }
 0x137   :  { %v1624_v27 = vpop.eup %1623 }
 0x138   :  { %v326_v35 = vsub.f32 %v318_v28, %v1624_v27 }
 0x139   :  { %v1626_v30 = vpop.eup %1625 }
 0x13a   :  { %v1628_v32 = vpop.eup %1627  ;;  %v327_v34 = vsub.f32 %v319_v26, %v1626_v30 }
 0x13b   :  { %v1630_v33 = vpop.eup %1629  ;;  %v325_v37 = vsub.f32 %v317_v31, %v1628_v32 }
 0x13c   :  { %v328_v36 = vsub.f32 %v320_v29, %v1630_v33 }
 0x13d   :  { %v333_v41 = vpack.c.bf16 %v327_v34, %v325_v37 }
 0x13e   :  { %v334_v38 = vpack.c.bf16 %v328_v36, %v326_v35 }
 0x13f   :  { %v1632_v43 = vpop.eup %1631 }
 0x140   :  { %1385 = vmatprep.mubr.msk.bf16.mxu1 %vm249_vm0, %v334_v38  ;;  %1387 = vmatprep.mubr.msk.bf16.mxu0 %vm249_vm0, %v334_v38  ;;  %v330_v49 = vsub.f32 %v322_v12, %v1632_v43 }
 0x141   :  { %v1634_v11 = vpop.eup %1633  ;;  %686 = vmatmul.mubr.bf16.vlgmr.msra.gmra.mxu1 %v333_v41  ;;  %739 = vmatmul.mubr.bf16.vlgmr.msra.gmra.mxu0 %v333_v41 }
 0x142   :  { %v1636_v46 = vpop.eup %1635  ;;  %v331_v48 = vsub.f32 %v323_v42, %v1634_v11  ;;  %1423 = vmatpush3.bf16.msra.mxu1 %v1592_v54 }
 0x143   :  { %v1638_v47 = vpop.eup %1637  ;;  %v329_v51 = vsub.f32 %v321_v45, %v1636_v46  ;;  %1424 = vmatprep.subr.bf16.mxu1 %v1593_v55 }
 0x144   :  { %v332_v50 = vsub.f32 %v324_v44, %v1638_v47 }
 0x145   :  { %v335_v53 = vpack.c.bf16 %v331_v48, %v329_v51 }
 0x146   :  { %v336_v52 = vpack.c.bf16 %v332_v50, %v330_v49  ;;  %1425 = vmatpush3.bf16.msra.mxu1 %v1594_v39 }
 0x147   :  { %1426 = vmatprep.subr.bf16.mxu1 %v1595_v56 }
 0x148   :  { %1386 = vmatprep.mubr.msk.bf16.mxu1 %vm249_vm0, %v336_v52  ;;  %1388 = vmatprep.mubr.msk.bf16.mxu0 %vm249_vm0, %v336_v52 }
 0x149   :  { %696 = vmatmul.mubr.bf16.gmra.mxu1 %v335_v53  ;;  %749 = vmatmul.mubr.bf16.gmra.mxu0 %v335_v53 }
 0x14a   :  { %1427 = vmatpush3.bf16.msra.mxu1 %v1596_v57 }
 0x14b   :  { %1428 = vmatprep.subr.bf16.mxu1 %v1597_v58 }
 0x14e   :  { %1429 = vmatpush3.bf16.msra.mxu1 %v1598_v59 }
 0x14f   :  { %1430 = vmatprep.subr.bf16.mxu1 %v1599_v60 }
 0x152   :  { %1431 = vmatpush3.bf16.msra.mxu1 %v1600_v61 }
 0x153   :  { %1432 = vmatprep.subr.bf16.mxu1 %v1601_v62 }
 0x156   :  { %1433 = vmatpush3.bf16.msra.mxu1 %v1602_v63 }
 0x157   :  { %1434 = vmatprep.subr.bf16.mxu1 %v1603_v0 }
 0x15a   :  { %1435 = vmatpush3.bf16.msra.mxu1 %v1604_v1 }
 0x15b   :  { %1436 = vmatprep.subr.bf16.mxu1 %v1605_v2 }
 0x15e   :  { %1437 = vmatpush3.bf16.msra.mxu1 %v1606_v3 }
 0x15f   :  { %1444 = vmatprep.subr.bf16.mxu1 %v1607_v4 }
 0x201   :  { %v687_v16 = vpop.f32.mrf.mxu1  ;;  %v740_v17 = vpop.f32.mrf.mxu0 }
 0x202   :  { %v688_v20 = vadd.f32 %v687_v16, %v390_v14  ;;  %v741_v21 = vadd.f32 %v740_v17, %v398_v15 }
 0x203   :  { %v689_v22 = vpop.f32.mrf.mxu1  ;;  %v742_v23 = vpop.f32.mrf.mxu0 }
 0x204   :  { %v690_v24 = vadd.f32 %v689_v22, %v394_v18  ;;  %v743_v25 = vadd.f32 %v742_v23, %v402_v19  ;;  %v759_v30 = vmax.f32 %v688_v20, 0.0  ;;  %v761_v31 = vmax.f32 %v741_v21, 0.0 }
 0x205   :  { %v691_v26 = vpop.f32.mrf.mxu1  ;;  %v744_v27 = vpop.f32.mrf.mxu0 }
 0x206   :  { %v692_v28 = vadd.f32 %v691_v26, %v390_v14  ;;  %v745_v29 = vadd.f32 %v744_v27, %v398_v15  ;;  %v760_v38 = vmax.f32 %v690_v24, 0.0  ;;  %v762_v41 = vmax.f32 %v743_v25, 0.0 }
 0x207   :  { %v693_v32 = vpop.f32.mrf.mxu1  ;;  %v746_v33 = vpop.f32.mrf.mxu0 }
 0x208   :  { %v763_v34 = vmax.f32 %v692_v28, 0.0  ;;  %v765_v35 = vmax.f32 %v745_v29, 0.0  ;;  %v694_v36 = vadd.f32 %v693_v32, %v394_v18  ;;  %v747_v37 = vadd.f32 %v746_v33, %v402_v19 }
 0x209   :  { %v697_v42 = vpop.f32.mrf.mxu1  ;;  %v750_v43 = vpop.f32.mrf.mxu0 }
 0x20a   :  { %v775_v12 = vadd.f32 %v763_v34, %v759_v30  ;;  %v789_v44 = vadd.f32 %v765_v35, %v761_v31  ;;  %v764_v11 = vmax.f32 %v694_v36, 0.0  ;;  %v766_v45 = vmax.f32 %v747_v37, 0.0 }
 0x20b   :  { %v698_v46 = vadd.f32 %v697_v42, %v390_v14  ;;  %v751_v47 = vadd.f32 %v750_v43, %v398_v15  ;;  %v699_v48 = vpop.f32.mrf.mxu1  ;;  %v752_v49 = vpop.f32.mrf.mxu0 }
 0x20c   :  { %v776_v50 = vrot.slane %v775_v12, 4  ;;  %v790_v51 = vrot.slane %v789_v44, 4  ;;  %v782_v52 = vadd.f32 %v764_v11, %v760_v38  ;;  %v796_v53 = vadd.f32 %v766_v45, %v762_v41 }
 0x20d   :  { %v767_v40 = vmax.f32 %v698_v46, 0.0  ;;  %v700_v54 = vadd.f32 %v699_v48, %v394_v18  ;;  %v753_v55 = vadd.f32 %v752_v49, %v402_v19  ;;  %v701_v39 = vpop.f32.mrf.mxu1  ;;  %v754_v56 = vpop.f32.mrf.mxu0  ;;  %v769_v61 = vmax.f32 %v751_v47, 0.0 }
 0x20e   :  { %v777_v57 = vadd.f32 %v776_v50, %v775_v12  ;;  %v791_v58 = vadd.f32 %v790_v51, %v789_v44  ;;  %v783_v59 = vrot.slane %v782_v52, 4  ;;  %v797_v60 = vrot.slane %v796_v53, 4 }
 0x20f   :  { %v768_v62 = vmax.f32 %v700_v54, 0.0  ;;  %v702_v63 = vadd.f32 %v701_v39, %v390_v14  ;;  %v755_v0 = vadd.f32 %v754_v56, %v398_v15  ;;  %v703_v1 = vpop.f32.mrf.mxu1  ;;  %v756_v2 = vpop.f32.mrf.mxu0  ;;  %v770_v21 = vmax.f32 %v753_v55, 0.0 }
 0x210   :  { %v778_v3 = vrot.slane %v777_v57, 2  ;;  %v792_v4 = vrot.slane %v791_v58, 2  ;;  %v784_v5 = vadd.f32 %v783_v59, %v782_v52  ;;  %v798_v7 = vadd.f32 %v797_v60, %v796_v53 }
 0x211   :  { %v771_v8 = vmax.f32 %v702_v63, 0.0  ;;  %v773_v9 = vmax.f32 %v755_v0, 0.0  ;;  %v704_v10 = vadd.f32 %v703_v1, %v394_v18  ;;  %v757_v13 = vadd.f32 %v756_v2, %v402_v19 }
 0x212   :  { %v779_v16 = vadd.f32 %v778_v3, %v777_v57  ;;  %v785_v17 = vrot.slane %v784_v5, 2  ;;  %v799_v20 = vrot.slane %v798_v7, 2  ;;  %v793_v14 = vadd.f32 %v792_v4, %v791_v58 }
 0x213   :  { %v803_v22 = vadd.f32 %v771_v8, %v767_v40  ;;  %v817_v23 = vadd.f32 %v773_v9, %v769_v61  ;;  %v772_v24 = vmax.f32 %v704_v10, 0.0  ;;  %v774_v25 = vmax.f32 %v757_v13, 0.0 }
 0x214   :  { %v786_v15 = vadd.f32 %v785_v17, %v784_v5  ;;  %v800_v26 = vadd.f32 %v799_v20, %v798_v7  ;;  %v780_v31 = vrot.slane %v779_v16, 1  ;;  %v794_v36 = vrot.slane %v793_v14, 1 }
 0x215   :  { %v804_v27 = vrot.slane %v803_v22, 4  ;;  %v818_v28 = vrot.slane %v817_v23, 4  ;;  %v810_v29 = vadd.f32 %v772_v24, %v768_v62  ;;  %v824_v30 = vadd.f32 %v774_v25, %v770_v21 }
 0x216   :  { %v787_v32 = vrot.slane %v786_v15, 1  ;;  %v801_v33 = vrot.slane %v800_v26, 1  ;;  %v781_v43 = vadd.f32 %v780_v31, %v779_v16  ;;  %v1779_v44 = vmov 1983009808  }
 0x217   :  { %v805_v18 = vadd.f32 %v804_v27, %v803_v22  ;;  %v819_v19 = vadd.f32 %v818_v28, %v817_v23  ;;  %v811_v34 = vrot.slane %v810_v29, 4  ;;  %v825_v35 = vrot.slane %v824_v30, 4 }
 0x218   :  { %v788_v12 = vadd.f32 %v787_v32, %v786_v15  ;;  %v850_v11 = vunpack.c.l.s4 %v1779_v44  ;;  %v802_v45 = vadd.f32 %v801_v33, %v800_v26  ;;  %v795_v50 = vadd.f32 %v794_v36, %v793_v14  ;;  %v1609_v36 = vld [vmem:[#allocation8 + $0xf0] sm:$0xff]  }
 0x219   :  { %v806_v37 = vrot.slane %v805_v18, 2  ;;  %v820_v38 = vrot.slane %v819_v19, 2  ;;  %v812_v41 = vadd.f32 %v811_v34, %v810_v29  ;;  %v826_v42 = vadd.f32 %v825_v35, %v824_v30 }
 0x21a   :  { %v831_v54 = vmul.f32 0.0625, %v781_v43  ;;  %v832_v55 = vmul.f32 0.0625, %v788_v12  ;;  %v851_v39 = vunpack.c.0.s8 %v850_v11  ;;  %v834_v56 = vmul.f32 0.0625, %v802_v45  ;;  %v1611_v12 = vld [vmem:[#allocation8 + $0xe8] sm:$0xff]   ;;  %v1613_v45 = vld [vmem:[#allocation8 + $0xe0] sm:$0xff]  }
 0x21b   :  { %v807_v46 = vadd.f32 %v806_v37, %v805_v18  ;;  %v821_v47 = vadd.f32 %v820_v38, %v819_v19  ;;  %v813_v48 = vrot.slane %v812_v41, 2  ;;  %v827_v49 = vrot.slane %v826_v42, 2  ;;  %v1608_v18 = vld [vmem:[#allocation8 + $0xb8] sm:$0xff]   ;;  %v1612_v11 = vld [vmem:[#allocation8 + $0xa8] sm:$0xff]  }
 0x21c   :  { %v1873_v61 = vmul.f32 0.0625, %v795_v50  ;;  %v896_v1 = vpack.c.bf16 %v831_v54, %v831_v54  ;;  %v847_v2 = vcombine.low %v831_v54, %v832_v55  ;;  %v854_v3 = vsub.s32 %v851_v39, %v1864_v6  ;;  %v1618_v50 = vld [vmem:[#allocation8 + $0x90] sm:$0xff]   ;;  %v1621_v54 = vld [vmem:[#allocation8 + $0xc0] sm:$0xff]  }
 0x21d   :  { %v808_v51 = vrot.slane %v807_v46, 1  ;;  %v822_v52 = vrot.slane %v821_v47, 1  ;;  %v814_v53 = vadd.f32 %v813_v48, %v812_v41  ;;  %v828_v40 = vadd.f32 %v827_v49, %v826_v42  ;;  %v1610_v42 = vld [vmem:[#allocation8 + $0xb0] sm:$0xff]   ;;  %v1616_v48 = vld [vmem:[#allocation8 + $0x98] sm:$0xff]  }
 0x21e   :  { %v848_v4 = vcombine.low %v1873_v61, %v834_v56  ;;  %v897_v10 = vpack.c.bf16 %v832_v55, %v832_v55  ;;  %v899_v13 = vpack.c.bf16 %v834_v56, %v834_v56  ;;  %v983_v21 = vunpack.c.l.b16 %v896_v1  ;;  %v1617_v49 = vld [vmem:[#allocation8 + $0xd0] sm:$0xff]   ;;  %v1622_v56 = vld [vmem:[#allocation8 + $0x80] sm:$0xff]  }
 0x21f   :  { %v809_v57 = vadd.f32 %v808_v51, %v807_v46  ;;  %v823_v58 = vadd.f32 %v822_v52, %v821_v47  ;;  %v815_v59 = vrot.slane %v814_v53, 1  ;;  %v829_v60 = vrot.slane %v828_v40, 1  ;;  %v1614_v46 = vld [vmem:[#allocation8 + $0xa0] sm:$0xff]   ;;  %v1615_v47 = vld [vmem:[#allocation8 + $0xd8] sm:$0xff]   ;;  %v1619_v51 = vld [vmem:[#allocation8 + $0xc8] sm:$0xff]  }
 0x220   :  { %v855_v24 = vrot.slane %v847_v2, %v854_v3  ;;  %v862_v25 = vrot.slane %v848_v4, %v854_v3  ;;  %v984_v15 = vunpack.c.l.b16 %v897_v10  ;;  %v986_v27 = vunpack.c.l.b16 %v899_v13 }
 0x221   :  { %v835_v62 = vmul.f32 0.0625, %v809_v57  ;;  %v816_v63 = vadd.f32 %v815_v59, %v814_v53  ;;  %v830_v0 = vadd.f32 %v829_v60, %v828_v40  ;;  %v1877_v7 = vmul.f32 0.0625, %v823_v58  ;;  %v1620_v40 = vld [vmem:[#allocation8 + $0x88] sm:$0xff]  }
 0x222   :  { %v863_v19 = vcombine.low %v855_v24, %v862_v25  ;;  %v898_v53 = vpack.c.bf16 %v1873_v61, %v1873_v61 }
 0x223   :  { %v900_v5 = vpack.c.bf16 %v835_v62, %v835_v62  ;;  %v836_v8 = vmul.f32 0.0625, %v816_v63  ;;  %v838_v9 = vmul.f32 0.0625, %v830_v0  ;;  %v902_v52 = vpack.c.bf16 %v1877_v7, %v1877_v7 }
 0x224   :  { %v985_v39 = vunpack.c.l.b16 %v898_v53 }
 0x225   :  { %v987_v16 = vunpack.c.l.b16 %v900_v5  ;;  %v864_v17 = vcombine.low %v835_v62, %v836_v8  ;;  %v865_v20 = vcombine.low %v1877_v7, %v838_v9  ;;  %v901_v22 = vpack.c.bf16 %v836_v8, %v836_v8 }
 0x226   :  { %v903_v23 = vpack.c.bf16 %v838_v9, %v838_v9  ;;  %v989_v55 = vunpack.c.l.b16 %v902_v52 }
 0x227   :  { %v872_v6 = vrot.slane %v864_v17, %v854_v3  ;;  %v879_v14 = vrot.slane %v865_v20, %v854_v3  ;;  %v988_v26 = vunpack.c.l.b16 %v901_v22  ;;  %v991_v29 = vsel %vm886_vm1, %v987_v16, %v983_v21 }
 0x228   :  { %v990_v28 = vunpack.c.l.b16 %v903_v23  ;;  %v995_v35 = vpack.c.b16 %v991_v29, %v991_v29  ;;  %v993_v57 = vsel %vm886_vm1, %v989_v55, %v985_v39 }
 0x229   :  { %v880_v30 = vcombine.low %v872_v6, %v879_v14  ;;  %v992_v31 = vsel %vm886_vm1, %v988_v26, %v984_v15  ;;  %v997_v58 = vpack.c.b16 %v993_v57, %v993_v57 }
 0x22a   :  { %v994_v32 = vsel %vm886_vm1, %v990_v28, %v986_v27  ;;  %v996_v33 = vpack.c.b16 %v992_v31, %v992_v31 }
 0x22b   :  { %v885_v34 = vrot.slane %v880_v30, 7  ;;  %v998_v37 = vpack.c.b16 %v994_v32, %v994_v32 }
 0x22c   :  { %1227 = vmatprep.mubr.bf16.mxu1 %v996_v33 }
 0x22d   :  { %v887_v38 = vsel %vm886_vm1, %v885_v34, %v863_v19  ;;  %1228 = vmatmul.mubr.bf16.vlgmr.msra.gmra.mxu1 %v995_v35 }
 0x22e   :  { %v889_v41 = vsel %vm888_vm2, %v885_v34, %v887_v38  ;;  %1445 = vmatpush3.bf16.msra.mxu1 %v1608_v18  ;;  %1267 = vmatprep.mubr.bf16.mxu1 %v998_v37 }
 0x22f   :  { %v891_v43 = vsel %vm890_vm3, %v885_v34, %v889_v41  ;;  %1446 = vmatprep.subr.bf16.mxu1 %v1609_v36 }
 0x230   :  { %v893_v44 = vsel %vm892_vm4, %v885_v34, %v891_v43 }
 0x231   :  { %895 = vst [vmem:[#allocation10] sm:$0xff] %v893_v44 }
 0x232   :  { %1447 = vmatpush3.bf16.msra.mxu1 %v1610_v42 }
 0x233   :  { %1448 = vmatprep.subr.bf16.mxu1 %v1611_v12 }
 0x236   :  { %1449 = vmatpush3.bf16.msra.mxu1 %v1612_v11 }
 0x237   :  { %1450 = vmatprep.subr.bf16.mxu1 %v1613_v45 }
 0x23a   :  { %1451 = vmatpush3.bf16.msra.mxu1 %v1614_v46 }
 0x23b   :  { %1452 = vmatprep.subr.bf16.mxu1 %v1615_v47 }
 0x23e   :  { %1453 = vmatpush3.bf16.msra.mxu1 %v1616_v48 }
 0x23f   :  { %1454 = vmatprep.subr.bf16.mxu1 %v1617_v49 }
 0x242   :  { %1455 = vmatpush3.bf16.msra.mxu1 %v1618_v50 }
 0x243   :  { %1456 = vmatprep.subr.bf16.mxu1 %v1619_v51 }
 0x246   :  { %1457 = vmatpush3.bf16.msra.mxu1 %v1620_v40 }
 0x247   :  { %1458 = vmatprep.subr.bf16.mxu1 %v1621_v54 }
 0x24a   :  { %1459 = vmatpush3.bf16.msra.mxu1 %v1622_v56 }
 0x24d   :  { %1268 = vmatmul.mubr.bf16.vlgmr.msra.gmra.mxu1 %v997_v58 }
 0x24e   :  { %1730 = shalt.err (!%p1727_p10)
}
 0x24f   :  { %1285 = dma.vmem_to_hbm [thread:$0]  %s1283_s25, 128, %s1904_s6, [#allocation4]   ;;  %v1389_v0 = vld [vmem:[%s1903_s5] ss:$0 sm:$0xff] }
 0x250   :  { %s1781_s8 = smov [#allocation11]  }
 0x251   :  { %s1292_s9 = sshll.u32 %s1781_s8, 4  ;;  %s1293_s9 = int_to_ptr.vmem [resolvable:$true] %s1292_s9 }
 0x252   :  { %s1739_s6 = scalar_lea.vmem %s1293_s9, 32  ;;  %p1744_p12 = scmp.lt.s32.totalorder %s1293_s9, %s1293_s9 }
 0x253   :  { %p1740_p11 = scmp.ne.s32.totalorder %s1293_s9, %s1739_s6  ;;  %p1745_p13 = scmp.lt.s32.totalorder %s1739_s6, %s1739_s6 }
 0x255   :  { %p1746_p0 = por %p1745_p13, %p1744_p12 }
 0x257   :  { %p1747_p1 = pnand %p1746_p0, %p1740_p11 }
 0x2ed   :  { %v1438_v59 = vpop.f32.mrf.mxu1 }
 0x2ef   :  { %v1439_v60 = vpop.f32.mrf.mxu1 }
 0x2f0   :  { %v1440_v63 = vadd.f32 %v1439_v60, %v1438_v59 }
 0x2f1   :  { %v1441_v61 = vpop.f32.mrf.mxu1 }
 0x2f2   :  { %v1230_v3 = vadd.f32 %v1440_v63, %v1389_v0 }
 0x2f3   :  { %v1442_v62 = vpop.f32.mrf.mxu1 }
 0x30d   :  { %v1460_v1 = vpop.f32.mrf.mxu1 }
 0x30f   :  { %v1461_v2 = vpop.f32.mrf.mxu1 }
 0x310   :  { %v1462_v4 = vadd.f32 %v1461_v2, %v1460_v1 }
 0x311   :  { %v1463_v5 = vpop.f32.mrf.mxu1 }
 0x312   :  { %v1270_v7 = vadd.f32 %v1462_v4, %v1230_v3 }
 0x313   :  { %v1464_v8 = vpop.f32.mrf.mxu1 }
 0x314   :  { %1275 = vst [vmem:[#allocation11] sm:$0x3] %v1270_v7 }
 0x315   :  { %1750 = shalt.err (!%p1747_p1)
}
 0x316   :  { %1295 = dma.vmem_to_hbm [thread:$0]  %s1293_s9, 32, %s1905_s7, [#allocation12]  }
 0x317   :  { %1765 = dma.done.wait [#allocation4], 128  }
 0x318   :  { %1766 = vsyncadd [#allocation4], 4294967168 }
 0x319   :  { %1767 = dma.done.wait [#allocation12], 32  }
 0x31a   :  { %1768 = vsyncadd [#allocation12], 4294967264 }
 0x31b   :  { %1302 = vsyncpa [#allocation3], 1 }
 0x31c   :  { %1303 = vsyncpa [#allocation6], 1 }
 0x31d   :  { %1304 = vsyncpa [#allocation9], 1 }
 0x31e   :  { %1305 = vsyncpa [#allocation4], 1 }
 0x31f   :  { %1306 = vsyncpa [#allocation12], 1 }

</bundles_post_ra>
